<compile_context>
chip_gen: v5e
topology: v5e:2x2
jax: 0.10.0
libtpu: 0.0.40
codegen_flags: <defaults>
</compile_context>

<pallas_src>
import functools

import jax
import jax.numpy as jnp
from jax import lax
from jax.experimental import pallas as pl
from jax.experimental.pallas import tpu as pltpu


def _round_up(x, m):
    return ((x + m - 1) // m) * m


def _roll(z, shift, axis):
    """jnp.roll-equivalent circular shift lowered to the XLU via pltpu.roll
    (which wants a non-negative static shift)."""
    n = z.shape[axis]
    s = shift % n
    if s == 0:
        return z
    return pltpu.roll(z, s, axis)


def _window_sum(z, m, axis, sign):
    """sum_{k=0}^{m-1} roll(z, sign*k, axis) using shift-doubling:
    O(log2 m) rolls + adds instead of O(m)."""
    if m <= 1:
        return z
    result = None
    offset = 0
    s = z          # sum of `size` consecutive shifted copies starting at shift 0
    size = 1
    rem = m
    while True:
        if rem & 1:
            piece = s if offset == 0 else _roll(s, sign * offset, axis)
            result = piece if result is None else result + piece
            offset += size
        rem >>= 1
        if not rem:
            break
        s = s + _roll(s, sign * size, axis)
        size *= 2
    return result


def _swf_kernel(x_ref, o_ref, *, radius, iteration, halo, th_out,
                valid_h, valid_w):
    r = radius
    th_in, wp = x_ref.shape
    j = pl.program_id(1)                                     # H-tile index

    inv_half = jnp.float32(1.0 / ((r + 1) * (2 * r + 1)))    # L, R, U, D
    inv_quad = jnp.float32(1.0 / ((r + 1) ** 2))             # NW, NE, SW, SE

    x0 = x_ref[...].astype(jnp.float32)

    # Valid-pixel mask in *global* image coordinates (hoisted out of the
    # iteration loop).  Re-zeroing the padding every iteration is what makes
    # the roll wrap-around equivalent to F.conv2d's zero padding.
    row0 = j * th_out - halo                                 # global row of local row 0
    rid = lax.broadcasted_iota(jnp.int32, (th_in, wp), 0) + row0
    cid = lax.broadcasted_iota(jnp.int32, (th_in, wp), 1)
    vmask = ((rid >= 0) & (rid < valid_h) & (cid < valid_w)).astype(jnp.float32)

    m = r + 1

    def body(_, x):
        # TODO(synk): for large radius (r >= ~8) on v6e/v7x, do the lane-axis
        # window sums as banded 0/1 (wp x wp) matmuls on the idle MXU (W tiled
        # to <= 256); the roll path remains best on v5e / small r.
        vu = _window_sum(x, m, 0, +1)          # rows [i-r .. i]
        vd = _window_sum(x, m, 0, -1)          # rows [i .. i+r]
        vfull = vu + vd - x                    # rows [i-r .. i+r]

        def fold(conv, best_d, best_abs):
            dk = conv - x
            ak = jnp.abs(dk)
            take = ak < best_abs               # strict < => first occurrence wins
            return jnp.where(take, dk, best_d), jnp.where(take, ak, best_abs)

        # Canonical order L, R, U, D, NW, NE, SW, SE (matches torch.argmin
        # tie-break), consuming intermediates eagerly to cap live tiles.
        best_d = _window_sum(vfull, m, 1, +1) * inv_half - x                      # L
        best_abs = jnp.abs(best_d)
        best_d, best_abs = fold(_window_sum(vfull, m, 1, -1) * inv_half,
                                best_d, best_abs)                                 # R

        hl_u = _window_sum(vu, m, 1, +1)
        hr_u = _window_sum(vu, m, 1, -1)
        best_d, best_abs = fold((hl_u + hr_u - vu) * inv_half, best_d, best_abs)  # U
        hl_d = _window_sum(vd, m, 1, +1)
        hr_d = _window_sum(vd, m, 1, -1)
        best_d, best_abs = fold((hl_d + hr_d - vd) * inv_half, best_d, best_abs)  # D
        best_d, best_abs = fold(hl_u * inv_quad, best_d, best_abs)                # NW
        best_d, best_abs = fold(hr_u * inv_quad, best_d, best_abs)                # NE
        best_d, best_abs = fold(hl_d * inv_quad, best_d, best_abs)                # SW
        best_d, best_abs = fold(hr_d * inv_quad, best_d, best_abs)                # SE

        return x + best_d * vmask              # keep zero padding exactly zero

    x = lax.fori_loop(0, iteration, body, x0)
    o_ref[...] = x[halo:halo + th_out, :].astype(o_ref.dtype)


def _tile_plan(n, h, w, r, its, max_tile_rows, vmem_limit_bytes):
    """Returns (wp, n_h_tiles, halo, th_out, th_in)."""
    wp = _round_up(max(w + r, 128), 128)
    # ~LIVE concurrently-live f32 tile-sized buffers inside the iteration body
    # (x, vu, vd, vfull, best_d/abs, hl/hr pairs, temporaries, mask, x0) plus
    # the double-buffered input/output blocks Pallas allocates.
    LIVE = 24
    rows_cap = max(8, (vmem_limit_bytes // (LIVE * wp * 4)) // 8 * 8)
    hp_full = _round_up(max(h + r, 8), 8)
    want_h_split = n < 2                   # keep >=2 parallel steps for v7x's 2 TCs
    if max_tile_rows is None and hp_full <= rows_cap and not want_h_split:
        return wp, 1, 0, hp_full, hp_full
    # Halo must cover r rows of wrap/edge error per in-kernel iteration.
    halo = _round_up(max(r * its, 1), 8)
    cap = rows_cap if max_tile_rows is None else max(8, (max_tile_rows // 8) * 8)
    if want_h_split and max_tile_rows is None:
        cap = min(cap, max(8, _round_up(-(-h // 2), 8) + 2 * halo))
    th_out = max(8, cap - 2 * halo)
    th_out = min(th_out, _round_up(h, 8))
    n_h_tiles = -(-h // th_out)
    return wp, n_h_tiles, halo, th_out, th_out + 2 * halo


def side_window_filter(im, radius, iteration, *, max_tile_rows=None,
                       vmem_limit_bytes=None):
    """Side-window box filter.  im: (B, C, H, W) NCHW (PyTorch convention)."""
    b, c, h, w = im.shape
    n = b * c
    r = int(radius)
    its = int(iteration)
    dt = im.dtype if jnp.issubdtype(im.dtype, jnp.floating) else jnp.float32
    if its <= 0:
        return im

    if vmem_limit_bytes is None:
        try:                                            # per-generation budget
            cap = int(pltpu.get_tpu_info().vmem_capacity_bytes)
        except Exception:
            cap = 64 * 1024 * 1024                      # conservative (v7x)
        vmem_limit_bytes = min(cap * 3 // 4, 100 * 1024 * 1024)

    wp, n_h_tiles, halo, th_out, th_in = _tile_plan(
        n, h, w, r, its, max_tile_rows, vmem_limit_bytes)

    # Zero-pad W to lane density (>= r zero cols) and H with the halo / roll
    # slack, then materialize the overlapping H tiles (halo duplication lives
    # only in HBM; overhead is O(halo / th_out)).
    hsrc = n_h_tiles * th_out + 2 * halo
    x = im.reshape(n, h, w).astype(dt)
    x = jnp.pad(x, ((0, 0), (halo, hsrc - halo - h), (0, wp - w)))
    if n_h_tiles == 1:
        x_tiles = x[:, None, :, :]                      # (n, 1, th_in, wp)
    else:
        rows = jnp.arange(n_h_tiles)[:, None] * th_out + jnp.arange(th_in)[None, :]
        x_tiles = x[:, rows, :]                         # (n, n_h_tiles, th_in, wp)

    kernel = functools.partial(
        _swf_kernel, radius=r, iteration=its, halo=halo, th_out=th_out,
        valid_h=h, valid_w=w)

    out = pl.pallas_call(
        kernel,
        out_shape=jax.ShapeDtypeStruct((n, n_h_tiles, th_out, wp), dt),
        grid=(n, n_h_tiles),
        in_specs=[pl.BlockSpec((None, None, th_in, wp),
                               lambda i, j: (i, j, 0, 0))],
        out_specs=pl.BlockSpec((None, None, th_out, wp),
                               lambda i, j: (i, j, 0, 0)),
        compiler_params=pltpu.CompilerParams(
            dimension_semantics=("parallel", "parallel"),
            vmem_limit_bytes=int(vmem_limit_bytes),
        ),
    )(x_tiles)

    out = out.reshape(n, n_h_tiles * th_out, wp)[:, :h, :w].reshape(b, c, h, w)
    # TODO(synk): add W tiling (with an r*iteration halo) for very wide images
    # where rounding W up to the next multiple of 128 wastes lanes/DMA.
    return out.astype(im.dtype)


def _ref_side_window_filter(im, radius, iteration):
    """Pure-JAX reference using lax.conv (mirrors the PyTorch module)."""
    r = radius
    k = 2 * r + 1
    ones = jnp.ones((k, k), jnp.float32)
    L = ones.at[:, r + 1:].set(0.0)
    Rk = ones.at[:, :r].set(0.0)
    U = ones.at[r + 1:, :].set(0.0)
    Dk = ones.at[:r, :].set(0.0)
    NW = U.at[:, r + 1:].set(0.0)
    NE = U.at[:, :r].set(0.0)
    SW = Dk.at[:, r + 1:].set(0.0)
    SE = Dk.at[:, :r].set(0.0)
    half = float((r + 1) * k)
    quad = float((r + 1) ** 2)
    weights = jnp.stack([L / half, Rk / half, U / half, Dk / half,
                         NW / quad, NE / quad, SW / quad, SE / quad])[:, None]
    b, c, h, w = im.shape
    x = im.reshape(b * c, 1, h, w).astype(jnp.float32)
    for _ in range(iteration):
        conv = lax.conv_general_dilated(
            x, weights, window_strides=(1, 1), padding=[(r, r), (r, r)],
            dimension_numbers=("NCHW", "OIHW", "NCHW"))
        d = conv - x
        idx = jnp.argmin(jnp.abs(d), axis=1, keepdims=True)
        dm = jnp.take_along_axis(d, idx, axis=1)
        x = x + dm
    return x.reshape(b, c, h, w).astype(im.dtype)


if __name__ == "__main__":
    key = jax.random.PRNGKey(0)
    k1, k2 = jax.random.split(key)

    # Test 1: small image, whole-plane (single H tile) path.
    b, c, h, w = 2, 4, 16, 16
    radius, iteration = 2, 3
    im = jax.random.uniform(k1, (b, c, h, w), dtype=jnp.float32)
    out = side_window_filter(im, radius, iteration)
    jax.block_until_ready(out)
    ref = _ref_side_window_filter(im, radius, iteration)
    assert out.shape == (b, c, h, w) and out.dtype == im.dtype
    assert jnp.allclose(out, ref, rtol=1e-5, atol=1e-5), \
        float(jnp.max(jnp.abs(out - ref)))

    # Test 2: force the H-tiled (halo) path and check it against both the
    # single-tile path and the conv reference.
    b2, c2, h2, w2 = 1, 3, 40, 24
    r2, it2 = 1, 2
    im2 = jax.random.uniform(k2, (b2, c2, h2, w2), dtype=jnp.float32)
    out_tiled = side_window_filter(im2, r2, it2, max_tile_rows=24)
    out_whole = side_window_filter(im2, r2, it2)
    jax.block_until_ready((out_tiled, out_whole))
    assert jnp.allclose(out_tiled, out_whole, rtol=1e-5, atol=1e-5), \
        float(jnp.max(jnp.abs(out_tiled - out_whole)))
    ref2 = _ref_side_window_filter(im2, r2, it2)
    assert jnp.allclose(out_tiled, ref2, rtol=1e-5, atol=1e-5), \
        float(jnp.max(jnp.abs(out_tiled - ref2)))

    print("KERNEL_OK")
</pallas_src>

<mosaic_0001>
module attributes {stable_mosaic.version = 11 : i64} {
  func.func @_swf_kernel(%arg0: i32, %arg1: i32, %arg2: memref<1x1x24x128xf32, #tpu.memory_space<vmem>>, %arg3: memref<1x1x24x128xf32, #tpu.memory_space<vmem>>) attributes {dimension_semantics = [#tpu.dimension_semantics<parallel>, #tpu.dimension_semantics<parallel>], iteration_bounds = array<i64: 8, 1>, scalar_prefetch = 0 : i64, scratch_operands = 0 : i64, tpu.core_type = #tpu.core_type<tc>, window_params = [{transform_indices = @transform_0, window_bounds = array<i64: 1, 1, 24, 128>}, {transform_indices = @transform_1, window_bounds = array<i64: 1, 1, 24, 128>}]} {
    %c0 = arith.constant 0 : index
    %c0_0 = arith.constant 0 : index
    %c0_1 = arith.constant 0 : index
    %c0_2 = arith.constant 0 : index
    %0 = vector.load %arg2[%c0, %c0_0, %c0_1, %c0_2] : memref<1x1x24x128xf32, #tpu.memory_space<vmem>>, vector<1x1x24x128xf32>
    %1 = vector.shape_cast %0 : vector<1x1x24x128xf32> to vector<24x128xf32>
    %c24_i32 = arith.constant 24 : i32
    %2 = arith.muli %arg1, %c24_i32 : i32
    %c0_i32 = arith.constant 0 : i32
    %3 = arith.subi %2, %c0_i32 : i32
    %4 = tpu.iota {dimensions = array<i32: 0>} : vector<24x128xi32>
    %5 = vector.broadcast %3 : i32 to vector<24x128xi32>
    %6 = arith.addi %4, %5 : vector<24x128xi32>
    %7 = tpu.iota {dimensions = array<i32: 1>} : vector<24x128xi32>
    %c0_i32_3 = arith.constant 0 : i32
    %8 = vector.broadcast %c0_i32_3 : i32 to vector<24x128xi32>
    %9 = arith.cmpi sge, %6, %8 : vector<24x128xi32>
    %c16_i32 = arith.constant 16 : i32
    %10 = vector.broadcast %c16_i32 : i32 to vector<24x128xi32>
    %11 = arith.cmpi slt, %6, %10 : vector<24x128xi32>
    %12 = arith.andi %9, %11 : vector<24x128xi1>
    %c16_i32_4 = arith.constant 16 : i32
    %13 = vector.broadcast %c16_i32_4 : i32 to vector<24x128xi32>
    %14 = arith.cmpi slt, %7, %13 : vector<24x128xi32>
    %15 = arith.andi %12, %14 : vector<24x128xi1>
    %16 = arith.extui %15 : vector<24x128xi1> to vector<24x128xi32>
    %17 = arith.sitofp %16 : vector<24x128xi32> to vector<24x128xf32>
    %cst = arith.constant 0.0666666701 : f32
    %cst_5 = arith.constant 0.111111112 : f32
    %c0_i32_6 = arith.constant 0 : i32
    %c3_i32 = arith.constant 3 : i32
    %18 = arith.addi %c0_i32_6, %c3_i32 : i32
    %c1_i32 = arith.constant 1 : i32
    %19 = scf.for %arg4 = %c0_i32_6 to %18 step %c1_i32 iter_args(%arg5 = %1) -> (vector<24x128xf32>)  : i32 {
      %c1_i32_11 = arith.constant 1 : i32
      %23 = tpu.dynamic_rotate %arg5 by %c1_i32_11 dim 0 : vector<24x128xf32>, i32 -> vector<24x128xf32>
      %24 = arith.addf %arg5, %23 : vector<24x128xf32>
      %c1_i32_12 = arith.constant 1 : i32
      %25 = tpu.dynamic_rotate %24 by %c1_i32_12 dim 0 : vector<24x128xf32>, i32 -> vector<24x128xf32>
      %26 = arith.addf %arg5, %25 : vector<24x128xf32>
      %c23_i32 = arith.constant 23 : i32
      %27 = tpu.dynamic_rotate %arg5 by %c23_i32 dim 0 : vector<24x128xf32>, i32 -> vector<24x128xf32>
      %28 = arith.addf %arg5, %27 : vector<24x128xf32>
      %c23_i32_13 = arith.constant 23 : i32
      %29 = tpu.dynamic_rotate %28 by %c23_i32_13 dim 0 : vector<24x128xf32>, i32 -> vector<24x128xf32>
      %30 = arith.addf %arg5, %29 : vector<24x128xf32>
      %31 = arith.addf %26, %30 : vector<24x128xf32>
      %32 = arith.subf %31, %arg5 : vector<24x128xf32>
      %c1_i32_14 = arith.constant 1 : i32
      %33 = tpu.dynamic_rotate %32 by %c1_i32_14 dim 1 : vector<24x128xf32>, i32 -> vector<24x128xf32>
      %34 = arith.addf %32, %33 : vector<24x128xf32>
      %c1_i32_15 = arith.constant 1 : i32
      %35 = tpu.dynamic_rotate %34 by %c1_i32_15 dim 1 : vector<24x128xf32>, i32 -> vector<24x128xf32>
      %36 = arith.addf %32, %35 : vector<24x128xf32>
      %37 = vector.broadcast %cst : f32 to vector<24x128xf32>
      %38 = arith.mulf %36, %37 : vector<24x128xf32>
      %39 = arith.subf %38, %arg5 : vector<24x128xf32>
      %40 = math.absf %39 : vector<24x128xf32>
      %c127_i32 = arith.constant 127 : i32
      %41 = tpu.dynamic_rotate %32 by %c127_i32 dim 1 : vector<24x128xf32>, i32 -> vector<24x128xf32>
      %42 = arith.addf %32, %41 : vector<24x128xf32>
      %c127_i32_16 = arith.constant 127 : i32
      %43 = tpu.dynamic_rotate %42 by %c127_i32_16 dim 1 : vector<24x128xf32>, i32 -> vector<24x128xf32>
      %44 = arith.addf %32, %43 : vector<24x128xf32>
      %45 = vector.broadcast %cst : f32 to vector<24x128xf32>
      %46 = arith.mulf %44, %45 : vector<24x128xf32>
      %47 = arith.subf %46, %arg5 : vector<24x128xf32>
      %48 = math.absf %47 : vector<24x128xf32>
      %49 = arith.cmpf olt, %48, %40 : vector<24x128xf32>
      %50 = arith.select %49, %47, %39 : vector<24x128xi1>, vector<24x128xf32>
      %51 = arith.select %49, %48, %40 : vector<24x128xi1>, vector<24x128xf32>
      %c1_i32_17 = arith.constant 1 : i32
      %52 = tpu.dynamic_rotate %26 by %c1_i32_17 dim 1 : vector<24x128xf32>, i32 -> vector<24x128xf32>
      %53 = arith.addf %26, %52 : vector<24x128xf32>
      %c1_i32_18 = arith.constant 1 : i32
      %54 = tpu.dynamic_rotate %53 by %c1_i32_18 dim 1 : vector<24x128xf32>, i32 -> vector<24x128xf32>
      %55 = arith.addf %26, %54 : vector<24x128xf32>
      %c127_i32_19 = arith.constant 127 : i32
      %56 = tpu.dynamic_rotate %26 by %c127_i32_19 dim 1 : vector<24x128xf32>, i32 -> vector<24x128xf32>
      %57 = arith.addf %26, %56 : vector<24x128xf32>
      %c127_i32_20 = arith.constant 127 : i32
      %58 = tpu.dynamic_rotate %57 by %c127_i32_20 dim 1 : vector<24x128xf32>, i32 -> vector<24x128xf32>
      %59 = arith.addf %26, %58 : vector<24x128xf32>
      %60 = arith.addf %55, %59 : vector<24x128xf32>
      %61 = arith.subf %60, %26 : vector<24x128xf32>
      %62 = vector.broadcast %cst : f32 to vector<24x128xf32>
      %63 = arith.mulf %61, %62 : vector<24x128xf32>
      %64 = arith.subf %63, %arg5 : vector<24x128xf32>
      %65 = math.absf %64 : vector<24x128xf32>
      %66 = arith.cmpf olt, %65, %51 : vector<24x128xf32>
      %67 = arith.select %66, %64, %50 : vector<24x128xi1>, vector<24x128xf32>
      %68 = arith.select %66, %65, %51 : vector<24x128xi1>, vector<24x128xf32>
      %c1_i32_21 = arith.constant 1 : i32
      %69 = tpu.dynamic_rotate %30 by %c1_i32_21 dim 1 : vector<24x128xf32>, i32 -> vector<24x128xf32>
      %70 = arith.addf %30, %69 : vector<24x128xf32>
      %c1_i32_22 = arith.constant 1 : i32
      %71 = tpu.dynamic_rotate %70 by %c1_i32_22 dim 1 : vector<24x128xf32>, i32 -> vector<24x128xf32>
      %72 = arith.addf %30, %71 : vector<24x128xf32>
      %c127_i32_23 = arith.constant 127 : i32
      %73 = tpu.dynamic_rotate %30 by %c127_i32_23 dim 1 : vector<24x128xf32>, i32 -> vector<24x128xf32>
      %74 = arith.addf %30, %73 : vector<24x128xf32>
      %c127_i32_24 = arith.constant 127 : i32
      %75 = tpu.dynamic_rotate %74 by %c127_i32_24 dim 1 : vector<24x128xf32>, i32 -> vector<24x128xf32>
      %76 = arith.addf %30, %75 : vector<24x128xf32>
      %77 = arith.addf %72, %76 : vector<24x128xf32>
      %78 = arith.subf %77, %30 : vector<24x128xf32>
      %79 = vector.broadcast %cst : f32 to vector<24x128xf32>
      %80 = arith.mulf %78, %79 : vector<24x128xf32>
      %81 = arith.subf %80, %arg5 : vector<24x128xf32>
      %82 = math.absf %81 : vector<24x128xf32>
      %83 = arith.cmpf olt, %82, %68 : vector<24x128xf32>
      %84 = arith.select %83, %81, %67 : vector<24x128xi1>, vector<24x128xf32>
      %85 = arith.select %83, %82, %68 : vector<24x128xi1>, vector<24x128xf32>
      %86 = vector.broadcast %cst_5 : f32 to vector<24x128xf32>
      %87 = arith.mulf %55, %86 : vector<24x128xf32>
      %88 = arith.subf %87, %arg5 : vector<24x128xf32>
      %89 = math.absf %88 : vector<24x128xf32>
      %90 = arith.cmpf olt, %89, %85 : vector<24x128xf32>
      %91 = arith.select %90, %88, %84 : vector<24x128xi1>, vector<24x128xf32>
      %92 = arith.select %90, %89, %85 : vector<24x128xi1>, vector<24x128xf32>
      %93 = vector.broadcast %cst_5 : f32 to vector<24x128xf32>
      %94 = arith.mulf %59, %93 : vector<24x128xf32>
      %95 = arith.subf %94, %arg5 : vector<24x128xf32>
      %96 = math.absf %95 : vector<24x128xf32>
      %97 = arith.cmpf olt, %96, %92 : vector<24x128xf32>
      %98 = arith.select %97, %95, %91 : vector<24x128xi1>, vector<24x128xf32>
      %99 = arith.select %97, %96, %92 : vector<24x128xi1>, vector<24x128xf32>
      %100 = vector.broadcast %cst_5 : f32 to vector<24x128xf32>
      %101 = arith.mulf %72, %100 : vector<24x128xf32>
      %102 = arith.subf %101, %arg5 : vector<24x128xf32>
      %103 = math.absf %102 : vector<24x128xf32>
      %104 = arith.cmpf olt, %103, %99 : vector<24x128xf32>
      %105 = arith.select %104, %102, %98 : vector<24x128xi1>, vector<24x128xf32>
      %106 = arith.select %104, %103, %99 : vector<24x128xi1>, vector<24x128xf32>
      %107 = vector.broadcast %cst_5 : f32 to vector<24x128xf32>
      %108 = arith.mulf %76, %107 : vector<24x128xf32>
      %109 = arith.subf %108, %arg5 : vector<24x128xf32>
      %110 = math.absf %109 : vector<24x128xf32>
      %111 = arith.cmpf olt, %110, %106 : vector<24x128xf32>
      %112 = arith.select %111, %109, %105 : vector<24x128xi1>, vector<24x128xf32>
      %113 = arith.mulf %112, %17 : vector<24x128xf32>
      %114 = arith.addf %arg5, %113 : vector<24x128xf32>
      scf.yield %114 : vector<24x128xf32>
    }
    %c0_7 = arith.constant 0 : index
    %c0_8 = arith.constant 0 : index
    %c0_9 = arith.constant 0 : index
    %c0_10 = arith.constant 0 : index
    %20 = vector.load %arg3[%c0_7, %c0_8, %c0_9, %c0_10] : memref<1x1x24x128xf32, #tpu.memory_space<vmem>>, vector<1x1x24x128xf32>
    %21 = vector.shape_cast %20 : vector<1x1x24x128xf32> to vector<24x128xf32>
    %22 = vector.shape_cast %19 : vector<24x128xf32> to vector<1x1x24x128xf32>
    tpu.vector_store %arg3[%c0_7, %c0_8, %c0_9, %c0_10], %22 {strides = array<i32>} : memref<1x1x24x128xf32, #tpu.memory_space<vmem>>, vector<1x1x24x128xf32>,
    return
  }
  func.func @transform_0(%arg0: i32, %arg1: i32) -> (i32, i32, i32, i32) {
    %c0_i32 = arith.constant 0 : i32
    %c0_i32_0 = arith.constant 0 : i32
    %c0_i32_1 = arith.constant 0 : i32
    return %arg0, %arg1, %c0_i32, %c0_i32_0 : i32, i32, i32, i32
  }
  func.func @transform_1(%arg0: i32, %arg1: i32) -> (i32, i32, i32, i32) {
    %c0_i32 = arith.constant 0 : i32
    %c0_i32_0 = arith.constant 0 : i32
    %c0_i32_1 = arith.constant 0 : i32
    return %arg0, %arg1, %c0_i32, %c0_i32_0 : i32, i32, i32, i32
  }
}

</mosaic_0001>

<bundles_post_ra>
// kernel: tpu_custom_call.1
= control target key start
LH: loop header
LB: loop body
LE: loop exit
PB: predicated region body
PF: predicated region fallthrough
CT: control target
= control target key end

     0   :  { %6 = vsyncpa [#allocation3], 0  ;;  %s1289_s0 = inlined_call_operand.hbm [shape: f32[8,1,24,128], index: 0, kind: input, shape index: {}]   ;;  %s1290_s1 = inlined_call_operand.hbm [shape: f32[8,1,24,128], index: 1, kind: output, shape index: {}]  }
   0x1   :  { %8 = vsyncpa [#allocation3 + $0x1], 0 }
   0x2   :  { %9 = vsyncpa [#allocation4], 0 }
   0x3   :  { %11 = vsyncpa [#allocation4 + $0x1], 0  ;;  %s900_s6 = smov 0   ;;  %s902_s7 = smov 0  }
   0x4   :  { %s904_s8 = smov 0   ;;  %s906_s9 = smov 0  }
   0x5   :  { %s908_s10 = smov 0   ;;  %s910_s11 = smov 0  }
   0x6 LB: > { %s621_s12 = sadd.s32 4294967295, %s865_s11   ;;  %s622_s13 = sadd.s32 4294967294, %s865_s11   ;;  %s865_s11 = sphi %s910_s11, %s17_s11   ;;  %s861_s10 = sphi %s908_s10, %s1311_s10   ;;  %s857_s9 = sphi %s906_s9, %s1310_s9   ;;  %s853_s8 = sphi %s904_s8, %s1309_s8   ;;  %s849_s7 = sphi %s902_s7, %s1308_s7   ;;  %s845_s6 = sphi %s900_s6, %s1307_s6  }
   0x7   : > { %s29_s14 = sadd.s32 1, %s861_s10  ;;  %s38_s15 = sadd.s32 1, %s853_s8 }
   0x8   : > { %p31_p0 = scmp.ge.s32.totalorder %s29_s14, 8  ;;  %p45_p1 = scmp.ne.s32.totalorder %s853_s8, %s849_s7 }
   0x9   : > { %p46_p2 = scmp.eq.s32.totalorder %s865_s11, 0  ;;  %p51_p3 = scmp.ne.s32.totalorder %s849_s7, %s845_s6 }
   0xa   : > { %s1313_s14 = smov (%p31_p0, %s29_s14), 0  ;;  %p52_p5 = scmp.eq.s32.totalorder %s621_s12, 0 }
   0xb   : > { %p941_p4 = por %p46_p2, %p45_p1  ;;  %s33_s17 = ssub.s32 %s861_s10, %s1313_s14 }
   0xc   : > { %p77_p6 = scmp.eq.s32.totalorder %s621_s12, 7  ;;  %p36_p7 = scmp.eq.s32.totalorder %s33_s17, 0 }
   0xd   : > { %p947_p8 = por %p52_p5, %p51_p3  ;;  %p83_p10 = scmp.eq.s32.totalorder %s622_s13, 7 }
   0xe   : > { %p951_p9 = por %p77_p6, %p45_p1  ;;  %p648_p12 = scmp.lt.s32.totalorder %s865_s11, 8 }
   0xf   : > { %s956_s20 = scalar_select %p36_p7, %s853_s8, %s38_s15  }
  0x10   : > { %p958_p11 = por %p83_p10, %p51_p3  ;;  %s103_s22 = sand.u32 1, %s853_s8  }
  0x11   : > { %s632_s23 = smul.u32 24, %s103_s22  ;;  %p641_p13 = pnand %p648_p12, %p941_p4 }
  0x12   : > { %s633_s24 = smul.u32 24, %s861_s10  ;;  %p626_p0 = scmp.ge.s32.totalorder %s865_s11, 1 }
  0x13   : > { %s107_s28 = scalar_lea.vmem [#allocation2], %s632_s23  ;;  %s104_s2 = scalar_lea.sflag [#allocation3], %s103_s22 }
  0x14   : > { %s114_s27 = scalar_lea.hbm %s1289_s0, %s633_s24  ;;  %s117_s29 = sshll.u32 %s107_s28, 4  ;;  %s118_s29 = int_to_ptr.vmem [resolvable:$true] %s117_s29 }
  0x15   : > { %s115_s30 = sshll.u32 %s114_s27, 4  ;;  %s883_s3 = smov 128   ;;  %s116_s30 = int_to_ptr.hbm [resolvable:$true] %s115_s30 }
  0x16   : > { %s884_s4 = smov 8   ;;  %p125_p1 = scmp.lt.s32.totalorder %s865_s11, 9 }
  0x17   : > { %643 = dma.hbm_to_vmem [thread:$0]  (!%p641_p13), %s116_s30, 384, %s118_s29, %s104_s2, %s883_s3, %s883_s3, %s884_s4  }
  0x18   : > { %p126_p2 = pnand %p626_p0, %p125_p1 }
  0x19   : > { %s973_s5 = sand.u32 (!%p126_p2), 1, %s849_s7  }
  0x1a   : > { %129 = sbr.rel (%p126_p2) target bundleno = 368 (0x170), region = 24  ;;  %s132_s13 = scalar_lea.sflag (!%p126_p2), [#allocation3], %s973_s5 }
  0x1b   : > { %s634_s12 = smul.u32 (!%p126_p2), 24, %s973_s5 }
  0x1d   : > { %s135_s15 = scalar_lea.vmem (!%p126_p2), [#allocation2], %s634_s12 }
  0x1f   : > { %836 = dma.done.wait (%p947_p8), %s132_s13, 384  }
  0x20   : > { %838 = vsyncadd (%p947_p8), %s132_s13, 4294966912  ;;  %v159_v0 = vlaneseq  ;;  %v885_v3 = vmov 0.0   ;;  %v155_v5 = vld [vmem:[%s135_s15] sm:$0xff]   ;;  %v156_v6 = vld [vmem:[%s135_s15 + $0x8] sm:$0xff]   ;;  %s985_s16 = scalar_lea.vmem [#allocation5], %s634_s12  ;;  %s993_s17 = smov 0  }
  0x21   : > { %v157_v7 = vld [vmem:[%s135_s15 + $0x10] sm:$0xff]  }
  0x22   : > { %v981_v1 = vshrl.u32 %v159_v0, 7  ;;  %v168_v2 = vand.u32 127, %v159_v0 }
  0x24   : > { %vm178_vm0 = vcmp.lt.s32.totalorder %v168_v2, 16 }
  0x25   : > { %v983_v4 = vsel %vm178_vm0, 1.0, %v885_v3 }
  0x26 LB: >> { %vm200_vm1 = vcmp.lt.s32.totalorder %v981_v1, 1  ;;  %vm219_vm2 = vcmp.lt.s32.totalorder %v981_v1, 7  ;;  %v197_v8 = vrot.slane %v877_v5, 7  ;;  %v198_v9 = vrot.slane %v873_v6, 7  ;;  %s886_s18 = smov 1   ;;  %s887_s22 = smov 127   ;;  %s881_s17 = sphi %s993_s17, %s193_s17   ;;  %v877_v5 = vphi %v155_v5, %v1306_v5   ;;  %v873_v6 = vphi %v156_v6, %v1305_v6   ;;  %v869_v7 = vphi %v157_v7, %v1304_v7  }
  0x27   : >> { %v199_v10 = vrot.slane %v869_v7, 7  ;;  %v216_v11 = vrot.slane %v877_v5, 1  ;;  %v217_v12 = vrot.slane %v873_v6, 1  ;;  %v218_v13 = vrot.slane %v869_v7, 1  ;;  %s193_s17 = sadd.s32 1, %s881_s17  }
  0x28   : >> { %v202_v16 = vsel %vm200_vm1, %v197_v8, %v198_v9  ;;  %p190_p3 = scmp.ge.s32.totalorder %s193_s17, 3  }
  0x29   : >> { %v201_v14 = vsel %vm200_vm1, %v198_v9, %v199_v10  ;;  %v203_v15 = vsel %vm200_vm1, %v199_v10, %v197_v8  ;;  %v205_v19 = vadd.f32 %v873_v6, %v202_v16  ;;  %v220_v20 = vsel %vm219_vm2, %v217_v12, %v218_v13  ;;  %s635_s23 = smul.u32 (%p190_p3), 24, %s857_s9  ;;  %s517_s24 = sshll.u32 (%p190_p3), %s985_s16, 4  ;;  %s518_s24 = int_to_ptr.vmem [resolvable:$true] %s517_s24 }
  0x2a   : >> { %v204_v17 = vadd.f32 %v877_v5, %v203_v15  ;;  %v206_v18 = vadd.f32 %v869_v7, %v201_v14  ;;  %v221_v21 = vsel %vm219_vm2, %v216_v11, %v217_v12  ;;  %v224_v22 = vadd.f32 %v873_v6, %v220_v20  ;;  %s503_s29 = scalar_lea.sflag (%p190_p3), [#allocation4], %s973_s5  ;;  %s787_s4 = scalar_lea.hbm (%p190_p3), %s1290_s1, 192 }
  0x2b   : >> { %v222_v23 = vsel %vm219_vm2, %v218_v13, %v216_v11  ;;  %v208_v26 = vrot.slane %v205_v19, 7  ;;  %v223_v27 = vadd.f32 %v877_v5, %v221_v21  ;;  %s516_s27 = scalar_lea.hbm (%p190_p3), %s1290_s1, %s635_s23 }
  0x2c   : >> { %v207_v24 = vrot.slane %v204_v17, 7  ;;  %v209_v25 = vrot.slane %v206_v18, 7  ;;  %v227_v28 = vrot.slane %v224_v22, 1  ;;  %v225_v29 = vadd.f32 %v869_v7, %v222_v23  ;;  %s519_s28 = sshll.u32 (%p190_p3), %s516_s27, 4  ;;  %s520_s28 = int_to_ptr.hbm [resolvable:$true] %s519_s28 }
  0x2d   : >> { %v226_v33 = vrot.slane %v223_v27, 1  ;;  %s781_s30 = sshra.s32 (%p190_p3), %s520_s28, 4  ;;  %s782_s30 = int_to_ptr.hbm [resolvable:$true] %s781_s30 }
  0x2e   : >> { %v212_v30 = vsel %vm200_vm1, %v209_v25, %v207_v24  ;;  %v210_v31 = vsel %vm200_vm1, %v208_v26, %v209_v25  ;;  %v211_v32 = vsel %vm200_vm1, %v207_v24, %v208_v26  ;;  %v228_v37 = vrot.slane %v225_v29, 1  ;;  %s783_s2 = scalar_lea.hbm (%p190_p3), %s782_s30, 24  ;;  %p788_p7 = scmp.lt.s32.totalorder (%p190_p3), %s782_s30, %s1290_s1 }
  0x2f   : >> { %v1040_v34 = vadd.f32 %v877_v5, %v212_v30  ;;  %v1043_v35 = vadd.f32 %v869_v7, %v210_v31  ;;  %v1046_v36 = vadd.f32 %v873_v6, %v211_v32  ;;  %v230_v38 = vsel %vm219_vm2, %v226_v33, %v227_v28  ;;  %p784_p4 = scmp.ne.s32.totalorder (%p190_p3), %s782_s30, %s783_s2  ;;  %p789_p8 = scmp.lt.s32.totalorder (%p190_p3), %s787_s4, %s783_s2 }
  0x30   : >> { %v229_v39 = vsel %vm219_vm2, %v227_v28, %v228_v37  ;;  %v231_v40 = vsel %vm219_vm2, %v228_v37, %v226_v33  ;;  %v1061_v41 = vadd.f32 %v877_v5, %v230_v38 }
  0x31   : >> { %304 = vrot.lane.b32.xlu0 %v1040_v34, %s886_s18  ;;  %308 = vrot.lane.b32.xlu1 %v1043_v35, %s886_s18  ;;  %v1064_v42 = vadd.f32 %v873_v6, %v229_v39  ;;  %v1067_v43 = vadd.f32 %v869_v7, %v231_v40  ;;  %p785_p5 = pnand (%p190_p3), %p784_p4, %p951_p9  ;;  %p790_p10 = por (%p190_p3), %p789_p8, %p788_p7 }
  0x32   : >> { %324 = vrot.lane.b32.xlu2 %v1046_v36, %s887_s22  ;;  %v235_v44 = vadd.f32 %v1061_v41, %v1040_v34 }
  0x33   : >> { %v236_v45 = vadd.f32 %v1064_v42, %v1046_v36  ;;  %v237_v46 = vadd.f32 %v1067_v43, %v1043_v35  ;;  %p786_p6 = pneg (%p190_p3), %p785_p5 }
  0x34   : >> { %v1082_v47 = vsub.f32 %v235_v44, %v877_v5 }
  0x35   : >> { %v1085_v48 = vsub.f32 %v236_v45, %v873_v6  ;;  %v1088_v49 = vsub.f32 %v237_v46, %v869_v7  ;;  %p791_p12 = pnand (%p190_p3), %p790_p10, %p786_p6 }
  0x39   : >> { %306 = vrot.lane.b32.xlu0 %v1046_v36, %s886_s18  ;;  %322 = vrot.lane.b32.xlu1 %v1040_v34, %s887_s22 }
  0x3a   : >> { %326 = vrot.lane.b32.xlu2 %v1043_v35, %s887_s22 }
  0x41   : >> { %241 = vrot.lane.b32.xlu0 %v1082_v47, %s886_s18  ;;  %243 = vrot.lane.b32.xlu1 %v1085_v48, %s886_s18 }
  0x42   : >> { %245 = vrot.lane.b32.xlu2 %v1088_v49, %s886_s18 }
  0x49   : >> { %268 = vrot.lane.b32.xlu0 %v1082_v47, %s887_s22  ;;  %270 = vrot.lane.b32.xlu1 %v1085_v48, %s887_s22 }
  0x4a   : >> { %272 = vrot.lane.b32.xlu2 %v1088_v49, %s887_s22 }
  0x51   : >> { %364 = vrot.lane.b32.xlu0 %v1061_v41, %s886_s18  ;;  %366 = vrot.lane.b32.xlu1 %v1064_v42, %s886_s18 }
  0x52   : >> { %368 = vrot.lane.b32.xlu2 %v1067_v43, %s886_s18 }
  0x59   : >> { %382 = vrot.lane.b32.xlu0 %v1061_v41, %s887_s22  ;;  %384 = vrot.lane.b32.xlu1 %v1064_v42, %s887_s22 }
  0x5a   : >> { %386 = vrot.lane.b32.xlu2 %v1067_v43, %s887_s22 }
  0x8c   : >> { %v325_v50 = vpop.permute.xlu2 %324 }
  0x8d   : >> { %v329_v0 = vadd.f32 %v325_v50, %v1046_v36 }
  0x94   : >> { %v327_v51 = vpop.permute.xlu2 %326 }
  0x95   : >> { %v330_v58 = vadd.f32 %v327_v51, %v1043_v35 }
  0x9c   : >> { %v246_v52 = vpop.permute.xlu2 %245 }
  0x9d   : >> { %v249_v9 = vadd.f32 %v246_v52, %v1088_v49 }
  0xa3   : >> { %v305_v53 = vpop.permute.xlu0 %304  ;;  %v309_v54 = vpop.permute.xlu1 %308 }
  0xa4   : >> { %v310_v55 = vadd.f32 %v305_v53, %v1040_v34  ;;  %v312_v56 = vadd.f32 %v309_v54, %v1043_v35  ;;  %v273_v57 = vpop.permute.xlu2 %272 }
  0xa5   : >> { %v276_v12 = vadd.f32 %v273_v57, %v1088_v49 }
  0xa6   : >> { %313 = vrot.lane.b32.xlu0 %v310_v55, %s886_s18  ;;  %317 = vrot.lane.b32.xlu2 %v312_v56, %s886_s18 }
  0xab   : >> { %v307_v59 = vpop.permute.xlu0 %306  ;;  %v323_v60 = vpop.permute.xlu1 %322 }
  0xac   : >> { %v311_v61 = vadd.f32 %v307_v59, %v1046_v36  ;;  %v328_v62 = vadd.f32 %v323_v60, %v1040_v34  ;;  %v369_v63 = vpop.permute.xlu2 %368 }
  0xad   : >> { %v372_v8 = vadd.f32 %v369_v63, %v1067_v43 }
  0xae   : >> { %315 = vrot.lane.b32.xlu1 %v311_v61, %s886_s18  ;;  %331 = vrot.lane.b32.xlu0 %v328_v62, %s887_s22 }
  0xaf   : >> { %335 = vrot.lane.b32.xlu2 %v330_v58, %s887_s22 }
  0xb3   : >> { %v242_v2 = vpop.permute.xlu0 %241  ;;  %v244_v3 = vpop.permute.xlu1 %243 }
  0xb4   : >> { %v387_v17 = vpop.permute.xlu2 %386  ;;  %v247_v19 = vadd.f32 %v242_v2, %v1082_v47  ;;  %v248_v20 = vadd.f32 %v244_v3, %v1085_v48 }
  0xb5   : >> { %v390_v18 = vadd.f32 %v387_v17, %v1067_v43 }
  0xb6   : >> { %333 = vrot.lane.b32.xlu1 %v329_v0, %s887_s22 }
  0xb7   : >> { %377 = vrot.lane.b32.xlu2 %v372_v8, %s886_s18 }
  0xbb   : >> { %v269_v10 = vpop.permute.xlu0 %268  ;;  %v271_v11 = vpop.permute.xlu1 %270 }
  0xbc   : >> { %v274_v21 = vadd.f32 %v269_v10, %v1082_v47  ;;  %v275_v22 = vadd.f32 %v271_v11, %v1085_v48 }
  0xbf   : >> { %254 = vrot.lane.b32.xlu2 %v249_v9, %s886_s18 }
  0xc3   : >> { %v365_v13 = vpop.permute.xlu0 %364  ;;  %v367_v14 = vpop.permute.xlu1 %366 }
  0xc4   : >> { %v370_v15 = vadd.f32 %v365_v13, %v1061_v41  ;;  %v371_v16 = vadd.f32 %v367_v14, %v1064_v42 }
  0xc6   : >> { %373 = vrot.lane.b32.xlu0 %v370_v15, %s886_s18  ;;  %375 = vrot.lane.b32.xlu1 %v371_v16, %s886_s18 }
  0xc7   : >> { %281 = vrot.lane.b32.xlu2 %v276_v12, %s887_s22 }
  0xcb   : >> { %v383_v23 = vpop.permute.xlu0 %382  ;;  %v385_v24 = vpop.permute.xlu1 %384 }
  0xcc   : >> { %v388_v25 = vadd.f32 %v383_v23, %v1061_v41  ;;  %v389_v26 = vadd.f32 %v385_v24, %v1064_v42 }
  0xce   : >> { %250 = vrot.lane.b32.xlu0 %v247_v19, %s886_s18  ;;  %252 = vrot.lane.b32.xlu1 %v248_v20, %s886_s18 }
  0xcf   : >> { %395 = vrot.lane.b32.xlu2 %v390_v18, %s887_s22 }
  0xd6   : >> { %277 = vrot.lane.b32.xlu0 %v274_v21, %s887_s22  ;;  %279 = vrot.lane.b32.xlu1 %v275_v22, %s887_s22 }
  0xde   : >> { %391 = vrot.lane.b32.xlu0 %v388_v25, %s887_s22  ;;  %393 = vrot.lane.b32.xlu1 %v389_v26, %s887_s22 }
 0x100   : >> { %v318_v27 = vpop.permute.xlu2 %317 }
 0x101   : >> { %v321_v33 = vadd.f32 %v318_v27, %v1043_v35 }
 0x103   : >> { %v426_v60 = vmul.f32 0.11111111, %v321_v33 }
 0x105   : >> { %v429_v10 = vsub.f32 %v426_v60, %v869_v7 }
 0x107   : >> { %v432_v17 = vand.u32 2147483647, %v429_v10 }
 0x109   : >> { %v336_v28 = vpop.permute.xlu2 %335 }
 0x10a   : >> { %v339_v31 = vadd.f32 %v336_v28, %v1043_v35 }
 0x10c   : >> { %v342_v37 = vadd.f32 %v339_v31, %v321_v33  ;;  %v444_v62 = vmul.f32 0.11111111, %v339_v31 }
 0x10e   : >> { %v345_v44 = vsub.f32 %v342_v37, %v1043_v35 }
 0x110   : >> { %v348_v53 = vmul.f32 0.06666667, %v345_v44 }
 0x111   : >> { %v378_v29 = vpop.permute.xlu2 %377 }
 0x112   : >> { %v381_v54 = vadd.f32 %v378_v29, %v1067_v43  ;;  %v351_v59 = vsub.f32 %v348_v53, %v869_v7 }
 0x114   : >> { %v354_v0 = vand.u32 2147483647, %v351_v59  ;;  %v462_v2 = vmul.f32 0.11111111, %v381_v54 }
 0x116   : >> { %v465_v14 = vsub.f32 %v462_v2, %v869_v7 }
 0x118   : >> { %v314_v50 = vpop.permute.xlu0 %313  ;;  %v468_v23 = vand.u32 2147483647, %v465_v14 }
 0x119   : >> { %v255_v30 = vpop.permute.xlu2 %254 }
 0x11a   : >> { %v258_v32 = vadd.f32 %v255_v30, %v1088_v49 }
 0x11c   : >> { %v261_v38 = vmul.f32 0.06666667, %v258_v32 }
 0x11e   : >> { %v264_v45 = vsub.f32 %v261_v38, %v869_v7 }
 0x120   : >> { %v316_v51 = vpop.permute.xlu1 %315  ;;  %v267_v55 = vand.u32 2147483647, %v264_v45  ;;  %v332_v3 = vpop.permute.xlu0 %331 }
 0x121   : >> { %v282_v39 = vpop.permute.xlu2 %281 }
 0x122   : >> { %v285_v40 = vadd.f32 %v282_v39, %v1088_v49 }
 0x124   : >> { %v288_v46 = vmul.f32 0.06666667, %v285_v40  ;;  %v337_v40 = vadd.f32 %v332_v3, %v1040_v34 }
 0x126   : >> { %v291_v52 = vsub.f32 %v288_v46, %v869_v7 }
 0x128   : >> { %v294_v56 = vand.u32 2147483647, %v291_v52  ;;  %v334_v8 = vpop.permute.xlu1 %333 }
 0x129   : >> { %v396_v57 = vpop.permute.xlu2 %395  ;;  %v338_v46 = vadd.f32 %v334_v8, %v1046_v36 }
 0x12a   : >> { %v399_v58 = vadd.f32 %v396_v57, %v1067_v43  ;;  %vm1160_vm3 = vcmp.lt.f32.partialorder %v294_v56, %v267_v55 }
 0x12b   : >> { %v303_v63 = vsel %vm1160_vm3, %v294_v56, %v267_v55  ;;  %v300_v13 = vsel %vm1160_vm3, %v291_v52, %v264_v45  ;;  %v319_v45 = vadd.f32 %v314_v50, %v1040_v34 }
 0x12c   : >> { %v402_v35 = vadd.f32 %v399_v58, %v381_v54  ;;  %vm357_vm4 = vcmp.lt.f32.partialorder %v354_v0, %v303_v63  ;;  %v480_v12 = vmul.f32 0.11111111, %v399_v58  ;;  %v320_v54 = vadd.f32 %v316_v51, %v1046_v36 }
 0x12d   : >> { %v363_v16 = vsel %vm357_vm4, %v354_v0, %v303_v63  ;;  %v360_v18 = vsel %vm357_vm4, %v351_v59, %v300_v13  ;;  %v340_v53 = vadd.f32 %v337_v40, %v319_v45 }
 0x12e   : >> { %v405_v61 = vsub.f32 %v402_v35, %v1067_v43  ;;  %v447_v43 = vsub.f32 %v444_v62, %v869_v7  ;;  %v483_v19 = vsub.f32 %v480_v12, %v869_v7  ;;  %v341_v56 = vadd.f32 %v338_v46, %v320_v54 }
 0x130   : >> { %v408_v9 = vmul.f32 0.06666667, %v405_v61  ;;  %v450_v22 = vand.u32 2147483647, %v447_v43  ;;  %v486_v28 = vand.u32 2147483647, %v483_v19  ;;  %v344_v62 = vsub.f32 %v341_v56, %v1046_v36 }
 0x132   : >> { %v411_v11 = vsub.f32 %v408_v9, %v869_v7  ;;  %v347_v9 = vmul.f32 0.06666667, %v344_v62 }
 0x134   : >> { %v414_v15 = vand.u32 2147483647, %v411_v11 }
 0x136   : >> { %vm417_vm5 = vcmp.lt.f32.partialorder %v414_v15, %v363_v16 }
 0x137   : >> { %v420_v20 = vsel %vm417_vm5, %v411_v11, %v360_v18  ;;  %v423_v21 = vsel %vm417_vm5, %v414_v15, %v363_v16  ;;  %v425_v15 = vmul.f32 0.11111111, %v320_v54 }
 0x138   : >> { %vm435_vm6 = vcmp.lt.f32.partialorder %v432_v17, %v423_v21  ;;  %v374_v24 = vpop.permute.xlu0 %373  ;;  %v376_v25 = vpop.permute.xlu1 %375 }
 0x139   : >> { %v438_v26 = vsel %vm435_vm6, %v429_v10, %v420_v20  ;;  %v441_v27 = vsel %vm435_vm6, %v432_v17, %v423_v21  ;;  %v380_v16 = vadd.f32 %v376_v25, %v1064_v42  ;;  %v443_v21 = vmul.f32 0.11111111, %v338_v46 }
 0x13a   : >> { %vm453_vm7 = vcmp.lt.f32.partialorder %v450_v22, %v441_v27 }
 0x13b   : >> { %v456_v29 = vsel %vm453_vm7, %v447_v43, %v438_v26  ;;  %v459_v30 = vsel %vm453_vm7, %v450_v22, %v441_v27  ;;  %v350_v22 = vsub.f32 %v347_v9, %v873_v6  ;;  %v428_v27 = vsub.f32 %v425_v15, %v873_v6 }
 0x13c   : >> { %vm471_vm8 = vcmp.lt.f32.partialorder %v468_v23, %v459_v30 }
 0x13d   : >> { %v474_v31 = vsel %vm471_vm8, %v465_v14, %v456_v29  ;;  %v477_v32 = vsel %vm471_vm8, %v468_v23, %v459_v30  ;;  %v442_v14 = vmul.f32 0.11111111, %v337_v40  ;;  %v431_v46 = vand.u32 2147483647, %v428_v27 }
 0x13e   : >> { %vm489_vm9 = vcmp.lt.f32.partialorder %v486_v28, %v477_v32 }
 0x13f   : >> { %v492_v33 = vsel %vm489_vm9, %v483_v19, %v474_v31  ;;  %v445_v25 = vsub.f32 %v442_v14, %v877_v5 }
 0x140   : >> { %v495_v37 = vmul.f32 0.0, %v492_v33  ;;  %v251_v38 = vpop.permute.xlu0 %250  ;;  %v253_v39 = vpop.permute.xlu1 %252  ;;  %v446_v33 = vsub.f32 %v443_v21, %v873_v6 }
 0x141   : >> { %v256_v52 = vadd.f32 %v251_v38, %v1082_v47  ;;  %v257_v55 = vadd.f32 %v253_v39, %v1085_v48 }
 0x142   : >> { %v1176_v7 = vadd.f32 %v869_v7, %v495_v37  }
 0x143   : >> { %v259_v59 = vmul.f32 0.06666667, %v256_v52  ;;  %v260_v50 = vmul.f32 0.06666667, %v257_v55  ;;  %v461_v52 = vmul.f32 0.11111111, %v380_v16 }
 0x144   : >> { %v1297_v44 = vmov %v1176_v7  ;;  %v343_v7 = vsub.f32 %v340_v53, %v1040_v34 }
 0x145   : >> { %v262_v63 = vsub.f32 %v259_v59, %v877_v5  ;;  %v263_v3 = vsub.f32 %v260_v50, %v873_v6  ;;  %501 = vst [vmem:[%s985_s16 + $0x10] sm:$0xff] (%p190_p3), %v1297_v44 }
 0x146   : >> { %v346_v2 = vmul.f32 0.06666667, %v343_v7 }
 0x147   : >> { %v265_v11 = vand.u32 2147483647, %v262_v63  ;;  %v266_v17 = vand.u32 2147483647, %v263_v3 }
 0x148   : >> { %v278_v57 = vpop.permute.xlu0 %277  ;;  %v280_v58 = vpop.permute.xlu1 %279  ;;  %v349_v43 = vsub.f32 %v346_v2, %v877_v5 }
 0x149   : >> { %v283_v49 = vadd.f32 %v278_v57, %v1082_v47  ;;  %v284_v35 = vadd.f32 %v280_v58, %v1085_v48  ;;  %v424_v47 = vmul.f32 0.11111111, %v319_v45  ;;  %v379_v48 = vadd.f32 %v374_v24, %v1061_v41 }
 0x14a   : >> { %v352_v29 = vand.u32 2147483647, %v349_v43  ;;  %v448_v45 = vand.u32 2147483647, %v445_v25  ;;  %v449_v57 = vand.u32 2147483647, %v446_v33 }
 0x14b   : >> { %v286_v60 = vmul.f32 0.06666667, %v283_v49  ;;  %v287_v61 = vmul.f32 0.06666667, %v284_v35  ;;  %v427_v20 = vsub.f32 %v424_v47, %v877_v5  ;;  %v460_v37 = vmul.f32 0.11111111, %v379_v48 }
 0x14d   : >> { %v289_v51 = vsub.f32 %v286_v60, %v877_v5  ;;  %v290_v0 = vsub.f32 %v287_v61, %v873_v6  ;;  %v430_v32 = vand.u32 2147483647, %v427_v20  ;;  %v463_v58 = vsub.f32 %v460_v37, %v877_v5 }
 0x14e   : >> { %v464_v60 = vsub.f32 %v461_v52, %v873_v6 }
 0x14f   : >> { %v292_v8 = vand.u32 2147483647, %v289_v51  ;;  %v293_v12 = vand.u32 2147483647, %v290_v0  ;;  %v466_v9 = vand.u32 2147483647, %v463_v58 }
 0x150   : >> { %v392_v34 = vpop.permute.xlu0 %391  ;;  %v394_v10 = vpop.permute.xlu1 %393 }
 0x151   : >> { %v397_v36 = vadd.f32 %v392_v34, %v1061_v41  ;;  %v398_v13 = vadd.f32 %v394_v10, %v1064_v42  ;;  %vm1196_vm10 = vcmp.lt.f32.partialorder %v292_v8, %v265_v11  ;;  %vm1202_vm11 = vcmp.lt.f32.partialorder %v293_v12, %v266_v17 }
 0x152   : >> { %v301_v28 = vsel %vm1196_vm10, %v292_v8, %v265_v11  ;;  %v302_v38 = vsel %vm1202_vm11, %v293_v12, %v266_v17  ;;  %v298_v53 = vsel %vm1196_vm10, %v289_v51, %v262_v63  ;;  %v299_v49 = vsel %vm1202_vm11, %v290_v0, %v263_v3 }
 0x153   : >> { %v400_v19 = vadd.f32 %v397_v36, %v379_v48  ;;  %v401_v26 = vadd.f32 %v398_v13, %v380_v16  ;;  %vm355_vm12 = vcmp.lt.f32.partialorder %v352_v29, %v301_v28  ;;  %v478_v55 = vmul.f32 0.11111111, %v397_v36 }
 0x154   : >> { %v361_v59 = vsel %vm355_vm12, %v352_v29, %v301_v28  ;;  %v358_v35 = vsel %vm355_vm12, %v349_v43, %v298_v53  ;;  %v479_v50 = vmul.f32 0.11111111, %v398_v13  ;;  %v467_v36 = vand.u32 2147483647, %v464_v60 }
 0x155   : >> { %v403_v24 = vsub.f32 %v400_v19, %v1061_v41  ;;  %v404_v31 = vsub.f32 %v401_v26, %v1064_v42  ;;  %v353_v41 = vand.u32 2147483647, %v350_v22  ;;  %v481_v2 = vsub.f32 %v478_v55, %v877_v5 }
 0x156   : >> { %v482_v48 = vsub.f32 %v479_v50, %v873_v6 }
 0x157   : >> { %v406_v30 = vmul.f32 0.06666667, %v403_v24  ;;  %v407_v40 = vmul.f32 0.06666667, %v404_v31  ;;  %vm1218_vm13 = vcmp.lt.f32.partialorder %v353_v41, %v302_v38  ;;  %v484_v13 = vand.u32 2147483647, %v481_v2 }
 0x158   : >> { %v362_v61 = vsel %vm1218_vm13, %v353_v41, %v302_v38  ;;  %v359_v51 = vsel %vm1218_vm13, %v350_v22, %v299_v49  ;;  %v485_v17 = vand.u32 2147483647, %v482_v48 }
 0x159   : >> { %v409_v39 = vsub.f32 %v406_v30, %v877_v5  ;;  %v410_v56 = vsub.f32 %v407_v40, %v873_v6 }
 0x15b   : >> { %v412_v54 = vand.u32 2147483647, %v409_v39  ;;  %v413_v7 = vand.u32 2147483647, %v410_v56 }
 0x15d   : >> { %vm415_vm14 = vcmp.lt.f32.partialorder %v412_v54, %v361_v59  ;;  %vm416_vm0 = vcmp.lt.f32.partialorder %v413_v7, %v362_v61 }
 0x15e   : >> { %v418_v62 = vsel %vm415_vm14, %v409_v39, %v358_v35  ;;  %v421_v63 = vsel %vm415_vm14, %v412_v54, %v361_v59  ;;  %v419_v3 = vsel %vm416_vm0, %v410_v56, %v359_v51  ;;  %v422_v47 = vsel %vm416_vm0, %v413_v7, %v362_v61 }
 0x15f   : >> { %vm433_vm15 = vcmp.lt.f32.partialorder %v430_v32, %v421_v63  ;;  %vm434_vm2 = vcmp.lt.f32.partialorder %v431_v46, %v422_v47  ;;  %v1304_v7 = vmov %v1297_v44 }
 0x160   : >> { %v436_v8 = vsel %vm433_vm15, %v427_v20, %v418_v62  ;;  %v439_v0 = vsel %vm433_vm15, %v430_v32, %v421_v63  ;;  %v437_v11 = vsel %vm434_vm2, %v428_v27, %v419_v3  ;;  %v440_v12 = vsel %vm434_vm2, %v431_v46, %v422_v47 }
 0x161   : >> { %vm451_vm1 = vcmp.lt.f32.partialorder %v448_v45, %v439_v0  ;;  %vm452_vm4 = vcmp.lt.f32.partialorder %v449_v57, %v440_v12 }
 0x162   : >> { %v454_v34 = vsel %vm451_vm1, %v445_v25, %v436_v8  ;;  %v457_v10 = vsel %vm451_vm1, %v448_v45, %v439_v0  ;;  %v455_v15 = vsel %vm452_vm4, %v446_v33, %v437_v11  ;;  %v458_v16 = vsel %vm452_vm4, %v449_v57, %v440_v12 }
 0x163   : >> { %vm469_vm3 = vcmp.lt.f32.partialorder %v466_v9, %v457_v10  ;;  %vm470_vm6 = vcmp.lt.f32.partialorder %v467_v36, %v458_v16 }
 0x164   : >> { %v472_v43 = vsel %vm469_vm3, %v463_v58, %v454_v34  ;;  %v475_v14 = vsel %vm469_vm3, %v466_v9, %v457_v10  ;;  %v473_v19 = vsel %vm470_vm6, %v464_v60, %v455_v15  ;;  %v476_v20 = vsel %vm470_vm6, %v467_v36, %v458_v16 }
 0x165   : >> { %vm487_vm5 = vcmp.lt.f32.partialorder %v484_v13, %v475_v14  ;;  %vm488_vm7 = vcmp.lt.f32.partialorder %v485_v17, %v476_v20 }
 0x166   : >> { %v490_v18 = vsel %vm487_vm5, %v481_v2, %v472_v43  ;;  %v491_v22 = vsel %vm488_vm7, %v482_v48, %v473_v19 }
 0x167   : >> { %v493_v21 = vmul.f32 %v983_v4, %v490_v18  ;;  %v494_v24 = vmul.f32 %v983_v4, %v491_v22  ;;  %192 = sbr.rel (!%p190_p3) target bundleno = 38 (0x26), region = 76 }
 0x169   : >> { %v496_v23 = vadd.f32 %v877_v5, %v493_v21   ;;  %v497_v26 = vadd.f32 %v873_v6, %v494_v24  }
 0x16b   : >> { %v1305_v6 = vmov %v497_v26  ;;  %v1306_v5 = vmov %v496_v23  ;;  %499 = vst [vmem:[%s985_s16] sm:$0xff] (%p190_p3), %v496_v23 }
 0x16c   : > { %500 = vst [vmem:[%s985_s16 + $0x8] sm:$0xff] %v497_v26 }
 0x16d   : > { %794 = shalt.err (!%p791_p12)
}
 0x16e   : > { %s888_s5 = smov 128   ;;  %s889_s15 = smov 8  }
 0x16f   : > { %638 = dma.vmem_to_hbm [thread:$0]  (%p951_p9), %s518_s24, 384, %s520_s28, %s503_s29, %s888_s5, %s888_s5, %s889_s15  }
 0x170 PF: > { %p649_p13 = scmp.ge.s32.totalorder %s865_s11, 2  ;;  %s534_s16 = sand.u32 1, %s845_s6  }
 0x171   : > { %s535_s17 = scalar_lea.sflag [#allocation4], %s534_s16 }
 0x172   : > { %p645_p0 = pnand %p649_p13, %p958_p11 }
 0x174   : > { %p646_p1 = pneg %p645_p0 }
 0x176   : > { %840 = dma.done.wait (%p646_p1), %s535_s17, 384  }
 0x177   : > { %842 = vsyncadd (%p646_p1), %s535_s17, 4294966912  ;;  %s17_s11 = sadd.s32 1, %s865_s11   ;;  %s1307_s6 = smov %s849_s7 }
 0x178   : > { %p14_p2 = scmp.ge.s32.totalorder %s17_s11, 10   ;;  %s1308_s7 = smov %s853_s8 }
 0x179   : > { %s1309_s8 = smov %s956_s20  ;;  %s1310_s9 = smov %s861_s10 }
 0x17a   : > { %s1311_s10 = smov %s1313_s14  ;;  %16 = sbr.rel (!%p14_p2) target bundleno = 6 (0x6), region = 87 }
 0x17f   :  { %541 = vsyncpa [#allocation3], 1 }
 0x180   :  { %543 = vsyncpa [#allocation3 + $0x1], 1 }
 0x181   :  { %544 = vsyncpa [#allocation4], 1 }
 0x182   :  { %546 = vsyncpa [#allocation4 + $0x1], 1 }

</bundles_post_ra>
